<compile_context>
chip_gen: v7x
topology: tpu7x:2x2x1
jax: 0.10.0
libtpu: 0.0.40
codegen_flags: <defaults>
</compile_context>

<pallas_src>
from functools import partial

import jax
import jax.numpy as jnp
from jax.experimental import pallas as pl
from jax.experimental.pallas import tpu as pltpu


# ---------------------------------------------------------------------------
# Kernel (one batch sample per grid step)
# ---------------------------------------------------------------------------
def _mbconv1d_kernel(
    x_ref,        # (1, Lp, Cp)   f32 (residual path) or bf16; halo rows / padded chans are 0
    mask_ref,     # (Lp, 1)       f32   1.0 on valid rows, 0.0 on halo/alignment rows
    w1_ref,       # (Cp, Hp)      bf16  expand 1x1 conv weight, BN1 scale folded in
    b1_ref,       # (1, Hp)       f32   folded BN1 bias
    wdw_ref,      # (K, 1, Hp)    f32   depthwise taps, BN2 scale folded in
    b2_ref,       # (1, Hp)       f32   folded BN2 bias
    wse1_ref,     # (Hp, Rp)      f32   SE reduce weight (transposed)
    bse1_ref,     # (1, Rp)       f32
    wse2_ref,     # (Rp, Hp)      f32   SE expand weight (transposed)
    bse2_ref,     # (1, Hp)       f32
    wp_ref,       # (Hp, Cop)     bf16  project 1x1 conv weight, BN3 scale folded in
    b3_ref,       # (1, Cop)      f32   folded BN3 bias
    o_ref,        # (1, L_out, Cop) f32
    *,
    kernel_size: int,
    stride: int,
    pad: int,
    use_res: bool,
):
    Lp, Cp = x_ref.shape[1], x_ref.shape[2]
    Hp = w1_ref.shape[1]
    L_out, Cop = o_ref.shape[1], o_ref.shape[2]
    K = kernel_size

    # --- 1) expand 1x1 conv (scale folded) + bias + Swish ---------------------
    x2 = x_ref[...].reshape(Lp, Cp)                        # layout-preserving flatten
    h = jnp.dot(x2.astype(jnp.bfloat16), w1_ref[...],
                preferred_element_type=jnp.float32)        # MXU: bf16 in / f32 acc
    h = h + b1_ref[...]
    h = h * jax.nn.sigmoid(h)                              # Swish (EUP + VPU)
    if pad > 0:
        # PyTorch zero-pads the *activation*; bias + Swish made the halo rows
        # nonzero.  One broadcast vmul with a precomputed mask re-zeros them.
        h = h * mask_ref[...]

    # --- 2) depthwise conv (groups = H, scale folded) + bias + Swish ----------
    # TODO(synk): shifted sublane slices h[k:k+span] may each materialize a
    # retiled VMEM copy; switch to pltpu.roll if the MLIR shows copies.
    wdw = wdw_ref[...]                                     # (K, 1, Hp), loaded once
    span = (L_out - 1) * stride + 1
    if stride == 1:
        acc = h[0:span, :] * wdw[0]
        for k in range(1, K):                              # static unroll: 1 vmul/tap
            acc = acc + h[k:k + span, :] * wdw[k]
    else:
        # Slice each tap with the stride: only the L_out needed rows are computed.
        acc = h[0:span:stride, :] * wdw[0]
        for k in range(1, K):
            acc = acc + h[k:k + span:stride, :] * wdw[k]
    dw = acc + b2_ref[...]
    dw = dw * jax.nn.sigmoid(dw)                           # (L_out, Hp)

    # --- 3) squeeze-and-excitation (small; stays f32) --------------------------
    s = jnp.mean(dw, axis=0, keepdims=True)                # (1, Hp) global avg pool
    z = jnp.dot(s, wse1_ref[...], preferred_element_type=jnp.float32) + bse1_ref[...]
    z = z * jax.nn.sigmoid(z)                              # Swish
    g = jax.nn.sigmoid(
        jnp.dot(z, wse2_ref[...], preferred_element_type=jnp.float32) + bse2_ref[...])
    se = dw * g                                            # (L_out, Hp)

    # --- 4) project 1x1 conv (scale folded) + bias ------------------------------
    y = jnp.dot(se.astype(jnp.bfloat16), wp_ref[...],
                preferred_element_type=jnp.float32)        # (L_out, Cop)
    y = y + b3_ref[...]

    # --- 5) residual (read directly from the input ref; x not kept live) -------
    if use_res:  # wrapper guarantees stride==1, Cin==Cout, L_out==L, f32 x
        y = y + x_ref[0, pl.ds(pad, L_out), :]

    o_ref[...] = y.reshape(1, L_out, Cop).astype(o_ref.dtype)   # lane-dense store


# ---------------------------------------------------------------------------
# Wrapper
# ---------------------------------------------------------------------------
def _round_up(v, m):
    return ((v + m - 1) // m) * m


def _pad_axis(a, axis, target):
    amt = target - a.shape[axis]
    if amt == 0:
        return a
    cfg = [(0, 0)] * a.ndim
    cfg[axis] = (0, amt)
    return jnp.pad(a, cfg)


def mbconv1d(x_ncl, params, *, kernel_size, stride, use_res):
    """x_ncl: (N, Cin, L) float32, PyTorch NCL layout.  Returns (N, Cout, L_out)."""
    N, Cin, L = x_ncl.shape
    H = params["w1"].shape[1]
    R = params["wse1"].shape[1]
    Cout = params["wp"].shape[1]
    K = kernel_size
    pad = K // 2
    L_out = (L + 2 * pad - K) // stride + 1

    if use_res:
        assert stride == 1 and Cin == Cout and L_out == L, \
            "residual requires stride==1 and Cin==Cout"

    # Channel dims padded to the 128-lane vreg width.
    Cp = _round_up(Cin, 128)
    Hp = _round_up(H, 128)
    Rp = _round_up(R, 128)
    Cop = _round_up(Cout, 128)

    # NCL -> NLC; pad channels; pre-pad the depthwise halo and round the padded
    # length up to a multiple of 8 sublanes (layout-preserving flatten in-kernel).
    x_nlc = _pad_axis(jnp.transpose(x_ncl, (0, 2, 1)), 2, Cp)       # (N, L, Cp)
    if not use_res:
        # x is cast to bf16 for the expand matmul anyway; ship it as bf16 to
        # halve the dominant HBM->VMEM DMA.  Residual path keeps f32 parity.
        x_nlc = x_nlc.astype(jnp.bfloat16)
    Lp = _round_up(L + 2 * pad, 8)
    xp = jnp.pad(x_nlc, ((0, 0), (pad, Lp - L - pad), (0, 0)))      # (N, Lp, Cp)

    # Precomputed halo mask: 1.0 on valid rows, 0.0 on halo / alignment rows.
    rows = jnp.arange(Lp, dtype=jnp.int32)
    mask = ((rows >= pad) & (rows < pad + L)).astype(jnp.float32).reshape(Lp, 1)

    def pad2(w, r, c):
        return _pad_axis(_pad_axis(w, 0, r), 1, c)

    # Fold BN scales into the conv weights (linear ops); keep only bias adds
    # in the kernel.  Big pointwise weights pre-cast to bf16 for the MXU.
    w1f = params["w1"] * params["bn1_s"]                            # (Cin, H)
    wdwf = params["wdw"] * params["bn2_s"]                          # (K, H)
    wpf = params["wp"] * params["bn3_s"]                            # (H, Cout)

    w1p = pad2(w1f, Cp, Hp).astype(jnp.bfloat16)
    wpp = pad2(wpf, Hp, Cop).astype(jnp.bfloat16)
    wdwp = _pad_axis(wdwf, 1, Hp).reshape(K, 1, Hp)
    wse1 = pad2(params["wse1"], Hp, Rp)
    wse2 = pad2(params["wse2"], Rp, Hp)
    b1 = _pad_axis(params["bn1_b"], 1, Hp)
    b2 = _pad_axis(params["bn2_b"], 1, Hp)
    b3 = _pad_axis(params["bn3_b"], 1, Cop)
    bse1 = _pad_axis(params["bse1"], 1, Rp)
    bse2 = _pad_axis(params["bse2"], 1, Hp)

    kernel = partial(
        _mbconv1d_kernel,
        kernel_size=K, stride=stride, pad=pad, use_res=use_res,
    )

    # Explicit VMEM budget: per-step blocks (x2 for double buffering), resident
    # weights, and in-kernel intermediates.  v5e scoped default is 16 MiB; v7x
    # has only 64 MiB physical VMEM per TensorCore.
    xbytes = 2 if xp.dtype == jnp.bfloat16 else 4
    est = (
        2 * (Lp * Cp * xbytes + L_out * Cop * 4)            # x / y blocks, double-buffered
        + Cp * Hp * 2 + Hp * Cop * 2                        # bf16 pointwise weights
        + (K * Hp + Hp * Rp + Rp * Hp) * 4                  # dw taps + SE weights
        + (2 * Lp * Hp + 2 * L_out * Hp + L_out * Cop) * 4  # in-kernel intermediates
    )
    vmem_limit = int(min(max(2 * est, 32 * 1024 * 1024), 64 * 1024 * 1024))

    zeros2 = lambda n: (0, 0)
    in_specs = [
        pl.BlockSpec((1, Lp, Cp), lambda n: (n, 0, 0)),     # x: one sample per step
        pl.BlockSpec((Lp, 1), zeros2),                      # halo mask (resident)
        pl.BlockSpec((Cp, Hp), zeros2),                     # w1 (resident)
        pl.BlockSpec((1, Hp), zeros2),                      # b1
        pl.BlockSpec((K, 1, Hp), lambda n: (0, 0, 0)),      # dw taps
        pl.BlockSpec((1, Hp), zeros2),                      # b2
        pl.BlockSpec((Hp, Rp), zeros2),                     # wse1
        pl.BlockSpec((1, Rp), zeros2),                      # bse1
        pl.BlockSpec((Rp, Hp), zeros2),                     # wse2
        pl.BlockSpec((1, Hp), zeros2),                      # bse2
        pl.BlockSpec((Hp, Cop), zeros2),                    # wp
        pl.BlockSpec((1, Cop), zeros2),                     # b3
    ]
    out_specs = pl.BlockSpec((1, L_out, Cop), lambda n: (n, 0, 0))

    out = pl.pallas_call(
        kernel,
        out_shape=jax.ShapeDtypeStruct((N, L_out, Cop), jnp.float32),
        grid=(N,),                                          # batch-parallel grid
        in_specs=in_specs,
        out_specs=out_specs,
        compiler_params=pltpu.CompilerParams(
            dimension_semantics=("parallel",),              # both TCs on v7x
            vmem_limit_bytes=vmem_limit,
        ),
    )(xp, mask, w1p, b1, wdwp, b2, wse1, bse1, wse2, bse2, wpp, b3)

    # TODO(synk): when chaining MBConv blocks, keep padded NLC between blocks
    # instead of slicing + transposing back to NCL after every call.
    out = out[:, :, :Cout]                    # drop padded output channels
    return jnp.transpose(out, (0, 2, 1))      # NLC -> NCL


# ---------------------------------------------------------------------------
# Pure-JAX reference (same folding and bf16 matmul casts) for a sanity check
# ---------------------------------------------------------------------------
def mbconv1d_ref(x_ncl, params, *, kernel_size, stride, use_res):
    x = jnp.transpose(x_ncl, (0, 2, 1)).astype(jnp.float32)     # (N, L, Cin)
    pad = kernel_size // 2

    w1f = (params["w1"] * params["bn1_s"]).astype(jnp.bfloat16)
    h = jnp.einsum("nlc,ch->nlh", x.astype(jnp.bfloat16), w1f,
                   preferred_element_type=jnp.float32)
    h = h + params["bn1_b"]
    h = h * jax.nn.sigmoid(h)

    L = h.shape[1]
    L_out = (L + 2 * pad - kernel_size) // stride + 1
    hp = jnp.pad(h, ((0, 0), (pad, pad), (0, 0)))
    wdwf = params["wdw"] * params["bn2_s"]                       # (K, H)
    acc = jnp.zeros((x.shape[0], L_out, h.shape[2]), jnp.float32)
    span = (L_out - 1) * stride + 1
    for k in range(kernel_size):
        acc = acc + hp[:, k:k + span:stride, :] * wdwf[k, :]
    dw = acc + params["bn2_b"]
    dw = dw * jax.nn.sigmoid(dw)

    s = jnp.mean(dw, axis=1)                                     # (N, H)
    z = s @ params["wse1"] + params["bse1"]
    z = z * jax.nn.sigmoid(z)
    g = jax.nn.sigmoid(z @ params["wse2"] + params["bse2"])
    se = dw * g[:, None, :]

    wpf = (params["wp"] * params["bn3_s"]).astype(jnp.bfloat16)
    y = jnp.einsum("nlh,hc->nlc", se.astype(jnp.bfloat16), wpf,
                   preferred_element_type=jnp.float32)
    y = y + params["bn3_b"]
    if use_res:
        y = y + x
    return jnp.transpose(y, (0, 2, 1))


# ---------------------------------------------------------------------------
# Deterministic parameter construction (folded eval-mode BatchNorm)
# ---------------------------------------------------------------------------
def make_params(key, in_channels, out_channels, kernel_size, expand_ratio, se_ratio):
    H = in_channels * expand_ratio
    R = max(1, int(H * se_ratio))
    eps = 1e-5

    def bn(key, C):
        k1, k2, k3, k4 = jax.random.split(key, 4)
        gamma = 1.0 + 0.1 * jax.random.normal(k1, (C,), jnp.float32)
        beta = 0.1 * jax.random.normal(k2, (C,), jnp.float32)
        mean = 0.1 * jax.random.normal(k3, (C,), jnp.float32)
        var = jnp.abs(jax.random.normal(k4, (C,), jnp.float32)) + 0.5
        scale = gamma / jnp.sqrt(var + eps)
        bias = beta - mean * scale
        return scale.reshape(1, C), bias.reshape(1, C)

    keys = jax.random.split(key, 10)
    s1, b1 = bn(keys[0], H)
    s2, b2 = bn(keys[1], H)
    s3, b3 = bn(keys[2], out_channels)

    return {
        "w1": 0.2 * jax.random.normal(keys[3], (in_channels, H), jnp.float32),
        "bn1_s": s1, "bn1_b": b1,
        "wdw": 0.2 * jax.random.normal(keys[4], (kernel_size, H), jnp.float32),
        "bn2_s": s2, "bn2_b": b2,
        "wse1": 0.2 * jax.random.normal(keys[5], (H, R), jnp.float32),
        "bse1": 0.1 * jax.random.normal(keys[6], (1, R), jnp.float32),
        "wse2": 0.2 * jax.random.normal(keys[7], (R, H), jnp.float32),
        "bse2": 0.1 * jax.random.normal(keys[8], (1, H), jnp.float32),
        "wp": 0.2 * jax.random.normal(keys[9], (H, out_channels), jnp.float32),
        "bn3_s": s3, "bn3_b": b3,
    }


# ---------------------------------------------------------------------------
if __name__ == "__main__":
    key = jax.random.PRNGKey(0)

    # Config A: residual block  MBConv1D(8, 8, k=3, stride=1, expand=4, se=0.25)
    N, Cin, L = 2, 8, 16
    Cout, K, stride, expand_ratio, se_ratio = 8, 3, 1, 4, 0.25
    use_res = (Cin == Cout) and (stride == 1)
    kx, kp, kx2, kp2 = jax.random.split(key, 4)
    x = jax.random.normal(kx, (N, Cin, L), jnp.float32)     # PyTorch NCL input
    params = make_params(kp, Cin, Cout, K, expand_ratio, se_ratio)

    out = mbconv1d(x, params, kernel_size=K, stride=stride, use_res=use_res)
    out = jax.block_until_ready(out)
    ref = mbconv1d_ref(x, params, kernel_size=K, stride=stride, use_res=use_res)
    assert out.shape == ref.shape
    assert jnp.allclose(out, ref, rtol=2e-3, atol=2e-3), "mismatch vs reference (res)"

    # Config B: non-residual block MBConv1D(8, 16, k=3, stride=1, expand=4, se=0.25)
    # (exercises the bf16-input fast path)
    Cout_b = 16
    x2 = jax.random.normal(kx2, (N, Cin, L), jnp.float32)
    params_b = make_params(kp2, Cin, Cout_b, K, expand_ratio, se_ratio)
    out_b = mbconv1d(x2, params_b, kernel_size=K, stride=1, use_res=False)
    out_b = jax.block_until_ready(out_b)
    ref_b = mbconv1d_ref(x2, params_b, kernel_size=K, stride=1, use_res=False)
    assert out_b.shape == ref_b.shape
    assert jnp.allclose(out_b, ref_b, rtol=2e-3, atol=2e-3), "mismatch vs reference (nores)"

    print("KERNEL_OK")
</pallas_src>

<mosaic_0001>
module attributes {stable_mosaic.version = 11 : i64} {
  func.func @_mbconv1d_kernel(%arg0: i32, %arg1: memref<1x24x128xf32, #tpu.memory_space<vmem>>, %arg2: memref<24x1xf32, #tpu.memory_space<vmem>>, %arg3: memref<128x128xbf16, #tpu.memory_space<vmem>>, %arg4: memref<1x128xf32, #tpu.memory_space<vmem>>, %arg5: memref<3x1x128xf32, #tpu.memory_space<vmem>>, %arg6: memref<1x128xf32, #tpu.memory_space<vmem>>, %arg7: memref<128x128xf32, #tpu.memory_space<vmem>>, %arg8: memref<1x128xf32, #tpu.memory_space<vmem>>, %arg9: memref<128x128xf32, #tpu.memory_space<vmem>>, %arg10: memref<1x128xf32, #tpu.memory_space<vmem>>, %arg11: memref<128x128xbf16, #tpu.memory_space<vmem>>, %arg12: memref<1x128xf32, #tpu.memory_space<vmem>>, %arg13: memref<1x16x128xf32, #tpu.memory_space<vmem>>) attributes {dimension_semantics = [#tpu.dimension_semantics<parallel>], iteration_bounds = array<i64: 2>, scalar_prefetch = 0 : i64, scratch_operands = 0 : i64, tpu.core_type = #tpu.core_type<tc>, window_params = [{transform_indices = @transform_0, window_bounds = array<i64: 1, 24, 128>}, {pipeline_mode = #tpu.pipeline_mode<synchronous>, transform_indices = @transform_1, window_bounds = array<i64: 24, 1>}, {pipeline_mode = #tpu.pipeline_mode<synchronous>, transform_indices = @transform_2, window_bounds = array<i64: 128, 128>}, {pipeline_mode = #tpu.pipeline_mode<synchronous>, transform_indices = @transform_3, window_bounds = array<i64: 1, 128>}, {pipeline_mode = #tpu.pipeline_mode<synchronous>, transform_indices = @transform_4, window_bounds = array<i64: 3, 1, 128>}, {pipeline_mode = #tpu.pipeline_mode<synchronous>, transform_indices = @transform_5, window_bounds = array<i64: 1, 128>}, {pipeline_mode = #tpu.pipeline_mode<synchronous>, transform_indices = @transform_6, window_bounds = array<i64: 128, 128>}, {pipeline_mode = #tpu.pipeline_mode<synchronous>, transform_indices = @transform_7, window_bounds = array<i64: 1, 128>}, {pipeline_mode = #tpu.pipeline_mode<synchronous>, transform_indices = @transform_8, window_bounds = array<i64: 128, 128>}, {pipeline_mode = #tpu.pipeline_mode<synchronous>, transform_indices = @transform_9, window_bounds = array<i64: 1, 128>}, {pipeline_mode = #tpu.pipeline_mode<synchronous>, transform_indices = @transform_10, window_bounds = array<i64: 128, 128>}, {pipeline_mode = #tpu.pipeline_mode<synchronous>, transform_indices = @transform_11, window_bounds = array<i64: 1, 128>}, {transform_indices = @transform_12, window_bounds = array<i64: 1, 16, 128>}]} {
    %c0 = arith.constant 0 : index
    %c0_0 = arith.constant 0 : index
    %c0_1 = arith.constant 0 : index
    %0 = vector.load %arg1[%c0, %c0_0, %c0_1] : memref<1x24x128xf32, #tpu.memory_space<vmem>>, vector<1x24x128xf32>
    %1 = vector.shape_cast %0 : vector<1x24x128xf32> to vector<24x128xf32>
    %2 = arith.truncf %1 : vector<24x128xf32> to vector<24x128xbf16>
    %c0_2 = arith.constant 0 : index
    %c0_3 = arith.constant 0 : index
    %3 = vector.load %arg3[%c0_2, %c0_3] : memref<128x128xbf16, #tpu.memory_space<vmem>>, vector<128x128xbf16>
    %cst = arith.constant dense<0.000000e+00> : vector<24x128xf32>
    %4 = tpu.matmul %2, %3, %cst {dimension_numbers = #tpu.dot_dimension_numbers<[1], [0], [0], [1], [0, 0, 1, 1], [], []>} : vector<24x128xbf16>, vector<128x128xbf16>, vector<24x128xf32> -> vector<24x128xf32>
    %c0_4 = arith.constant 0 : index
    %c0_5 = arith.constant 0 : index
    %5 = vector.load %arg4[%c0_4, %c0_5] : memref<1x128xf32, #tpu.memory_space<vmem>>, vector<1x128xf32>
    %6 = vector.broadcast %5 : vector<1x128xf32> to vector<24x128xf32>
    %7 = arith.addf %4, %6 : vector<24x128xf32>
    %8 = arith.negf %7 : vector<24x128xf32>
    %9 = math.exp %8 : vector<24x128xf32>
    %cst_6 = arith.constant 1.000000e+00 : f32
    %10 = vector.broadcast %cst_6 : f32 to vector<24x128xf32>
    %11 = arith.addf %10, %9 : vector<24x128xf32>
    %12 = arith.divf %10, %11 : vector<24x128xf32>
    %13 = arith.mulf %7, %12 : vector<24x128xf32>
    %c0_7 = arith.constant 0 : index
    %c0_8 = arith.constant 0 : index
    %14 = vector.load %arg2[%c0_7, %c0_8] : memref<24x1xf32, #tpu.memory_space<vmem>>, vector<24x1xf32>
    %15 = vector.broadcast %14 : vector<24x1xf32> to vector<24x128xf32>
    %16 = arith.mulf %13, %15 : vector<24x128xf32>
    %c0_9 = arith.constant 0 : index
    %c0_10 = arith.constant 0 : index
    %c0_11 = arith.constant 0 : index
    %17 = vector.load %arg5[%c0_9, %c0_10, %c0_11] : memref<3x1x128xf32, #tpu.memory_space<vmem>>, vector<3x1x128xf32>
    %18 = vector.extract_strided_slice %16 {offsets = [0, 0], sizes = [16, 128], strides = [1, 1]} : vector<24x128xf32> to vector<16x128xf32>
    %19 = vector.extract_strided_slice %17 {offsets = [0, 0, 0], sizes = [1, 1, 128], strides = [1, 1, 1]} : vector<3x1x128xf32> to vector<1x1x128xf32>
    %20 = vector.shape_cast %19 : vector<1x1x128xf32> to vector<1x128xf32>
    %21 = vector.broadcast %20 : vector<1x128xf32> to vector<16x128xf32>
    %22 = arith.mulf %18, %21 : vector<16x128xf32>
    %23 = vector.extract_strided_slice %16 {offsets = [1, 0], sizes = [16, 128], strides = [1, 1]} : vector<24x128xf32> to vector<16x128xf32>
    %24 = vector.extract_strided_slice %17 {offsets = [1, 0, 0], sizes = [1, 1, 128], strides = [1, 1, 1]} : vector<3x1x128xf32> to vector<1x1x128xf32>
    %25 = vector.shape_cast %24 : vector<1x1x128xf32> to vector<1x128xf32>
    %26 = vector.broadcast %25 : vector<1x128xf32> to vector<16x128xf32>
    %27 = arith.mulf %23, %26 : vector<16x128xf32>
    %28 = arith.addf %22, %27 : vector<16x128xf32>
    %29 = vector.extract_strided_slice %16 {offsets = [2, 0], sizes = [16, 128], strides = [1, 1]} : vector<24x128xf32> to vector<16x128xf32>
    %30 = vector.extract_strided_slice %17 {offsets = [2, 0, 0], sizes = [1, 1, 128], strides = [1, 1, 1]} : vector<3x1x128xf32> to vector<1x1x128xf32>
    %31 = vector.shape_cast %30 : vector<1x1x128xf32> to vector<1x128xf32>
    %32 = vector.broadcast %31 : vector<1x128xf32> to vector<16x128xf32>
    %33 = arith.mulf %29, %32 : vector<16x128xf32>
    %34 = arith.addf %28, %33 : vector<16x128xf32>
    %c0_12 = arith.constant 0 : index
    %c0_13 = arith.constant 0 : index
    %35 = vector.load %arg6[%c0_12, %c0_13] : memref<1x128xf32, #tpu.memory_space<vmem>>, vector<1x128xf32>
    %36 = vector.broadcast %35 : vector<1x128xf32> to vector<16x128xf32>
    %37 = arith.addf %34, %36 : vector<16x128xf32>
    %38 = arith.negf %37 : vector<16x128xf32>
    %39 = math.exp %38 : vector<16x128xf32>
    %cst_14 = arith.constant 1.000000e+00 : f32
    %40 = vector.broadcast %cst_14 : f32 to vector<16x128xf32>
    %41 = arith.addf %40, %39 : vector<16x128xf32>
    %42 = arith.divf %40, %41 : vector<16x128xf32>
    %43 = arith.mulf %37, %42 : vector<16x128xf32>
    %cst_15 = arith.constant dense<0.000000e+00> : vector<128xf32>
    %44 = vector.multi_reduction <add>, %43, %cst_15 [0] : vector<16x128xf32> to vector<128xf32>
    %45 = vector.shape_cast %44 : vector<128xf32> to vector<1x128xf32>
    %cst_16 = arith.constant 1.600000e+01 : f32
    %46 = vector.broadcast %cst_16 : f32 to vector<1x128xf32>
    %47 = arith.divf %45, %46 : vector<1x128xf32>
    %c0_17 = arith.constant 0 : index
    %c0_18 = arith.constant 0 : index
    %48 = vector.load %arg7[%c0_17, %c0_18] : memref<128x128xf32, #tpu.memory_space<vmem>>, vector<128x128xf32>
    %cst_19 = arith.constant dense<0.000000e+00> : vector<1x128xf32>
    %49 = tpu.matmul %47, %48, %cst_19 {dimension_numbers = #tpu.dot_dimension_numbers<[1], [0], [0], [1], [0, 0, 1, 1], [], []>} : vector<1x128xf32>, vector<128x128xf32>, vector<1x128xf32> -> vector<1x128xf32>
    %c0_20 = arith.constant 0 : index
    %c0_21 = arith.constant 0 : index
    %50 = vector.load %arg8[%c0_20, %c0_21] : memref<1x128xf32, #tpu.memory_space<vmem>>, vector<1x128xf32>
    %51 = arith.addf %49, %50 : vector<1x128xf32>
    %52 = arith.negf %51 : vector<1x128xf32>
    %53 = math.exp %52 : vector<1x128xf32>
    %cst_22 = arith.constant 1.000000e+00 : f32
    %54 = vector.broadcast %cst_22 : f32 to vector<1x128xf32>
    %55 = arith.addf %54, %53 : vector<1x128xf32>
    %56 = arith.divf %54, %55 : vector<1x128xf32>
    %57 = arith.mulf %51, %56 : vector<1x128xf32>
    %c0_23 = arith.constant 0 : index
    %c0_24 = arith.constant 0 : index
    %58 = vector.load %arg9[%c0_23, %c0_24] : memref<128x128xf32, #tpu.memory_space<vmem>>, vector<128x128xf32>
    %cst_25 = arith.constant dense<0.000000e+00> : vector<1x128xf32>
    %59 = tpu.matmul %57, %58, %cst_25 {dimension_numbers = #tpu.dot_dimension_numbers<[1], [0], [0], [1], [0, 0, 1, 1], [], []>} : vector<1x128xf32>, vector<128x128xf32>, vector<1x128xf32> -> vector<1x128xf32>
    %c0_26 = arith.constant 0 : index
    %c0_27 = arith.constant 0 : index
    %60 = vector.load %arg10[%c0_26, %c0_27] : memref<1x128xf32, #tpu.memory_space<vmem>>, vector<1x128xf32>
    %61 = arith.addf %59, %60 : vector<1x128xf32>
    %62 = arith.negf %61 : vector<1x128xf32>
    %63 = math.exp %62 : vector<1x128xf32>
    %cst_28 = arith.constant 1.000000e+00 : f32
    %64 = vector.broadcast %cst_28 : f32 to vector<1x128xf32>
    %65 = arith.addf %64, %63 : vector<1x128xf32>
    %66 = arith.divf %64, %65 : vector<1x128xf32>
    %67 = vector.broadcast %66 : vector<1x128xf32> to vector<16x128xf32>
    %68 = arith.mulf %43, %67 : vector<16x128xf32>
    %69 = arith.truncf %68 : vector<16x128xf32> to vector<16x128xbf16>
    %c0_29 = arith.constant 0 : index
    %c0_30 = arith.constant 0 : index
    %70 = vector.load %arg11[%c0_29, %c0_30] : memref<128x128xbf16, #tpu.memory_space<vmem>>, vector<128x128xbf16>
    %cst_31 = arith.constant dense<0.000000e+00> : vector<16x128xf32>
    %71 = tpu.matmul %69, %70, %cst_31 {dimension_numbers = #tpu.dot_dimension_numbers<[1], [0], [0], [1], [0, 0, 1, 1], [], []>} : vector<16x128xbf16>, vector<128x128xbf16>, vector<16x128xf32> -> vector<16x128xf32>
    %c0_32 = arith.constant 0 : index
    %c0_33 = arith.constant 0 : index
    %72 = vector.load %arg12[%c0_32, %c0_33] : memref<1x128xf32, #tpu.memory_space<vmem>>, vector<1x128xf32>
    %73 = vector.broadcast %72 : vector<1x128xf32> to vector<16x128xf32>
    %74 = arith.addf %71, %73 : vector<16x128xf32>
    %c0_34 = arith.constant 0 : index
    %c1 = arith.constant 1 : index
    %c0_35 = arith.constant 0 : index
    %75 = vector.load %arg1[%c0_34, %c1, %c0_35] : memref<1x24x128xf32, #tpu.memory_space<vmem>>, vector<1x16x128xf32>
    %76 = vector.shape_cast %75 : vector<1x16x128xf32> to vector<16x128xf32>
    %77 = arith.addf %74, %76 : vector<16x128xf32>
    %78 = vector.shape_cast %77 : vector<16x128xf32> to vector<1x16x128xf32>
    %c0_36 = arith.constant 0 : index
    %c0_37 = arith.constant 0 : index
    %c0_38 = arith.constant 0 : index
    %79 = vector.load %arg13[%c0_36, %c0_37, %c0_38] : memref<1x16x128xf32, #tpu.memory_space<vmem>>, vector<1x16x128xf32>
    tpu.vector_store %arg13[%c0_36, %c0_37, %c0_38], %78 {strides = array<i32>} : memref<1x16x128xf32, #tpu.memory_space<vmem>>, vector<1x16x128xf32>,
    return
  }
  func.func @transform_0(%arg0: i32) -> (i32, i32, i32) {
    %c0_i32 = arith.constant 0 : i32
    %c0_i32_0 = arith.constant 0 : i32
    %c0_i32_1 = arith.constant 0 : i32
    return %arg0, %c0_i32, %c0_i32_0 : i32, i32, i32
  }
  func.func @transform_1(%arg0: i32) -> (i32, i32) {
    %c0_i32 = arith.constant 0 : i32
    %c0_i32_0 = arith.constant 0 : i32
    %c0_i32_1 = arith.constant 0 : i32
    return %c0_i32, %c0_i32_0 : i32, i32
  }
  func.func @transform_2(%arg0: i32) -> (i32, i32) {
    %c0_i32 = arith.constant 0 : i32
    %c0_i32_0 = arith.constant 0 : i32
    %c0_i32_1 = arith.constant 0 : i32
    return %c0_i32, %c0_i32_0 : i32, i32
  }
  func.func @transform_3(%arg0: i32) -> (i32, i32) {
    %c0_i32 = arith.constant 0 : i32
    %c0_i32_0 = arith.constant 0 : i32
    %c0_i32_1 = arith.constant 0 : i32
    return %c0_i32, %c0_i32_0 : i32, i32
  }
  func.func @transform_4(%arg0: i32) -> (i32, i32, i32) {
    %c0_i32 = arith.constant 0 : i32
    %c0_i32_0 = arith.constant 0 : i32
    %c0_i32_1 = arith.constant 0 : i32
    %c0_i32_2 = arith.constant 0 : i32
    return %c0_i32, %c0_i32_0, %c0_i32_1 : i32, i32, i32
  }
  func.func @transform_5(%arg0: i32) -> (i32, i32) {
    %c0_i32 = arith.constant 0 : i32
    %c0_i32_0 = arith.constant 0 : i32
    %c0_i32_1 = arith.constant 0 : i32
    return %c0_i32, %c0_i32_0 : i32, i32
  }
  func.func @transform_6(%arg0: i32) -> (i32, i32) {
    %c0_i32 = arith.constant 0 : i32
    %c0_i32_0 = arith.constant 0 : i32
    %c0_i32_1 = arith.constant 0 : i32
    return %c0_i32, %c0_i32_0 : i32, i32
  }
  func.func @transform_7(%arg0: i32) -> (i32, i32) {
    %c0_i32 = arith.constant 0 : i32
    %c0_i32_0 = arith.constant 0 : i32
    %c0_i32_1 = arith.constant 0 : i32
    return %c0_i32, %c0_i32_0 : i32, i32
  }
  func.func @transform_8(%arg0: i32) -> (i32, i32) {
    %c0_i32 = arith.constant 0 : i32
    %c0_i32_0 = arith.constant 0 : i32
    %c0_i32_1 = arith.constant 0 : i32
    return %c0_i32, %c0_i32_0 : i32, i32
  }
  func.func @transform_9(%arg0: i32) -> (i32, i32) {
    %c0_i32 = arith.constant 0 : i32
    %c0_i32_0 = arith.constant 0 : i32
    %c0_i32_1 = arith.constant 0 : i32
    return %c0_i32, %c0_i32_0 : i32, i32
  }
  func.func @transform_10(%arg0: i32) -> (i32, i32) {
    %c0_i32 = arith.constant 0 : i32
    %c0_i32_0 = arith.constant 0 : i32
    %c0_i32_1 = arith.constant 0 : i32
    return %c0_i32, %c0_i32_0 : i32, i32
  }
  func.func @transform_11(%arg0: i32) -> (i32, i32) {
    %c0_i32 = arith.constant 0 : i32
    %c0_i32_0 = arith.constant 0 : i32
    %c0_i32_1 = arith.constant 0 : i32
    return %c0_i32, %c0_i32_0 : i32, i32
  }
  func.func @transform_12(%arg0: i32) -> (i32, i32, i32) {
    %c0_i32 = arith.constant 0 : i32
    %c0_i32_0 = arith.constant 0 : i32
    %c0_i32_1 = arith.constant 0 : i32
    return %arg0, %c0_i32, %c0_i32_0 : i32, i32, i32
  }
}

</mosaic_0001>

<bundles_post_ra>
// kernel: tpu_custom_call.1
= control target key start
LH: loop header
LB: loop body
LE: loop exit
PB: predicated region body
PF: predicated region fallthrough
CT: control target
= control target key end

     0   :  { %s2240_s0 = inlined_call_operand.hbm [shape: f32[2,24,128], index: 0, kind: input, shape index: {}]   ;;  %s2241_s1 = inlined_call_operand.vmem [shape: f32[24,1], index: 1, kind: input, shape index: {}]   ;;  %s2242_s2 = inlined_call_operand.hbm [shape: bf16[128,128], index: 2, kind: input, shape index: {}]   ;;  %s2243_s3 = inlined_call_operand.vmem [shape: f32[1,128], index: 3, kind: input, shape index: {}]   ;;  %s2244_s4 = inlined_call_operand.vmem [shape: f32[3,1,128], index: 4, kind: input, shape index: {}]   ;;  %s2245_s5 = inlined_call_operand.vmem [shape: f32[1,128], index: 5, kind: input, shape index: {}]   ;;  %s2246_s6 = inlined_call_operand.hbm [shape: f32[128,128], index: 6, kind: input, shape index: {}]   ;;  %s2247_s7 = inlined_call_operand.vmem [shape: f32[1,128], index: 7, kind: input, shape index: {}]   ;;  %s2248_s8 = inlined_call_operand.hbm [shape: f32[128,128], index: 8, kind: input, shape index: {}]   ;;  %s2249_s9 = inlined_call_operand.vmem [shape: f32[1,128], index: 9, kind: input, shape index: {}]   ;;  %s2250_s10 = inlined_call_operand.hbm [shape: bf16[128,128], index: 10, kind: input, shape index: {}]   ;;  %s2251_s11 = inlined_call_operand.vmem [shape: f32[1,128], index: 11, kind: input, shape index: {}]   ;;  %s2252_s12 = inlined_call_operand.hbm [shape: f32[2,16,128], index: 12, kind: output, shape index: {}]  }
   0x1   :  { %2261 = sst [smem:[#allocation18_spill]] %s2245_s5 }
   0x2   :  { %2262 = sst [smem:[#allocation19_spill]] %s2247_s7 }
   0x3   :  { %2263 = sst [smem:[#allocation20_spill]] %s2249_s9 }
   0x4   :  { %2264 = sst [smem:[#allocation21_spill]] %s2251_s11 }
   0x5   :  { %2265 = sst [smem:[#allocation22_spill]] %s2252_s12 }
   0x6   :  { %17 = vsyncpa [#allocation3], 0 }
   0x7   :  { %19 = vsyncpa [#allocation3 + $0x1], 0 }
   0x8   :  { %20 = vsyncpa [#allocation6], 0 }
   0x9   :  { %21 = vsyncpa [#allocation9], 0 }
   0xa   :  { %22 = vsyncpa [#allocation4], 0 }
   0xb   :  { %24 = vsyncpa [#allocation4 + $0x1], 0  ;;  %s1886_s21 = smov 0   ;;  %s1888_s22 = smov 0  }
   0xc   :  { %s1890_s23 = smov 0   ;;  %s1892_s24 = smov 0  }
   0xd LB: > { %2266 = sst [smem:[#allocation16_spill]] %s1791_s21  ;;  %s1907_s25 = sadd.s32 4294967295, %s1803_s24   ;;  %s1803_s24 = sphi %s1892_s24, %s2296_s24   ;;  %s1799_s23 = sphi %s1890_s23, %s2295_s23   ;;  %s1795_s22 = sphi %s1888_s22, %s2294_s22   ;;  %s1791_s21 = sphi %s1886_s21, %s2293_s21  }
   0xe   : > { %s1181_s26 = sadd.s32 4294967294, %s1803_s24   ;;  %p50_p0 = scmp.ne.s32.totalorder %s1795_s22, %s1791_s21 }
   0xf   : > { %p2255_p1 = scmp.eq.s32.totalorder %s1907_s25, 0  ;;  %p311_p3 = scmp.eq.s32.totalorder %s1181_s26, 1 }
  0x10   : > { %p1182_p5 = scmp.ge.s32.totalorder %s1803_s24, 1  ;;  %p318_p7 = scmp.lt.s32.totalorder %s1803_s24, 3 }
  0x11   : > { %p1916_p4 = por %p2255_p1, %p50_p0  ;;  %p1921_p6 = por %p311_p3, %p50_p0 }
  0x12   : > { %p1926_p8 = pnand %p1182_p5, %p318_p7  ;;  %s1805_s30 = smov [#allocation5]  }
  0x13   : > { %s2267_s27 = scalar_select %p1916_p4, 1, 0 }
  0x14   : > { %s2268_s28 = scalar_select %p1921_p6, 1, 0 }
  0x15   : > { %s2270_s29 = scalar_select %p1926_p8, 1, 0 }
  0x16   : > { %2269 = sst [smem:[#allocation17_spill]] %s2268_s28  ;;  %s333_s13 = sshll.u32 %s1805_s30, 4  ;;  %s334_s13 = int_to_ptr.vmem [resolvable:$true] %s333_s13 }
  0x17   : > { %p1464_p9 = pneg %p1926_p8  ;;  %s1806_s15 = smov [#allocation8]  }
  0x18   : > { %s371_s16 = sshll.u32 %s1806_s15, 4  ;;  %s1587_s19 = scalar_lea.hbm %s2242_s2, 1024  ;;  %s372_s16 = int_to_ptr.vmem [resolvable:$true] %s371_s16 }
  0x19   : > { %p1935_p11 = pnand %p1464_p9, %p2255_p1  ;;  %p1588_p12 = scmp.ne.s32.totalorder %s2242_s2, %s1587_s19 }
  0x1a   : > { %p1594_p5 = scmp.lt.u32.totalorder %s1587_s19, %s2242_s2 }
  0x1b   : > { %p1947_p13 = pneg %p1935_p11 }
  0x1d   : > { %p1590_p0 = pnand %p1947_p13, %p1588_p12 }
  0x1f   : > { %p1591_p3 = pneg %p1590_p0 }
  0x21   : > { %p1596_p7 = pnand %p1594_p5, %p1591_p3 }
  0x23   : > { %1599 = shalt.err (!%p1596_p7)
}
  0x24   : > { %s1600_s15 = scalar_lea.vmem %s334_s13, 1024  ;;  %p1608_p2 = scmp.lt.s32.totalorder %s334_s13, %s334_s13 }
  0x25   : > { %p1601_p9 = scmp.ne.s32.totalorder %s334_s13, %s1600_s15  ;;  %p1609_p6 = scmp.lt.s32.totalorder %s1600_s15, %s1600_s15 }
  0x27   : > { %p1603_p10 = pnand %p1601_p9, %p1947_p13  ;;  %p1610_p4 = por %p1609_p6, %p1608_p2 }
  0x29   : > { %p1604_p1 = pneg %p1603_p10 }
  0x2b   : > { %p1611_p8 = pnand %p1610_p4, %p1604_p1 }
  0x2d   : > { %1614 = shalt.err (!%p1611_p8)
}
  0x2e   : > { %s2259_s17 = smov 64   ;;  %s1808_s18 = smov 4  }
  0x2f   : > { %1467 = dma.hbm_to_vmem [thread:$0]  (!%p1935_p11), %s2242_s2, 1024, %s334_s13, [#allocation6], %s2259_s17, %s2259_s17, %s1808_s18  }
  0x30   : > { %s1809_s19 = smov [#allocation7]   ;;  %s1615_s12 = scalar_lea.hbm %s2248_s8, 2048 }
  0x31   : > { %s355_s20 = sshll.u32 %s1809_s19, 4  ;;  %p1616_p1 = scmp.ne.s32.totalorder %s2248_s8, %s1615_s12  ;;  %s356_s20 = int_to_ptr.vmem [resolvable:$true] %s355_s20 }
  0x32   : > { %p1622_p6 = scmp.lt.u32.totalorder %s1615_s12, %s2248_s8 }
  0x33   : > { %p1618_p2 = pnand %p1616_p1, %p1947_p13 }
  0x35   : > { %p1619_p4 = pneg %p1618_p2 }
  0x37   : > { %p1624_p8 = pnand %p1622_p6, %p1619_p4 }
  0x39   : > { %1627 = shalt.err (!%p1624_p8)
}
  0x3a   : > { %s1628_s13 = scalar_lea.vmem %s372_s16, 2048  ;;  %p1636_p3 = scmp.lt.s32.totalorder %s372_s16, %s372_s16 }
  0x3b   : > { %p1629_p10 = scmp.ne.s32.totalorder %s372_s16, %s1628_s13  ;;  %p1637_p5 = scmp.lt.s32.totalorder %s1628_s13, %s1628_s13 }
  0x3d   : > { %p1631_p12 = pnand %p1629_p10, %p1947_p13  ;;  %p1638_p7 = por %p1637_p5, %p1636_p3 }
  0x3f   : > { %p1632_p0 = pneg %p1631_p12 }
  0x41   : > { %p1639_p9 = pnand %p1638_p7, %p1632_p0 }
  0x43   : > { %1642 = shalt.err (!%p1639_p9)
}
  0x44   : > { %s2260_s9 = smov 128   ;;  %s1811_s11 = smov 8  }
  0x45   : > { %1473 = dma.hbm_to_vmem [thread:$0]  (!%p1935_p11), %s2248_s8, 2048, %s372_s16, [#allocation9], %s2260_s9, %s2260_s9, %s1811_s11  }
  0x46   : > { %s1643_s28 = scalar_lea.hbm %s2246_s6, 2048 }
  0x47   : > { %p1644_p1 = scmp.ne.s32.totalorder %s2246_s6, %s1643_s28  ;;  %p1650_p6 = scmp.lt.u32.totalorder %s1643_s28, %s2246_s6 }
  0x49   : > { %p1646_p2 = pnand %p1644_p1, %p1947_p13 }
  0x4b   : > { %p1647_p4 = pneg %p1646_p2 }
  0x4d   : > { %p1652_p8 = pnand %p1650_p6, %p1647_p4 }
  0x4f   : > { %1655 = shalt.err (!%p1652_p8)
}
  0x50   : > { %s1656_s5 = scalar_lea.vmem %s356_s20, 2048  ;;  %p1664_p3 = scmp.lt.s32.totalorder %s356_s20, %s356_s20 }
  0x51   : > { %p1657_p10 = scmp.ne.s32.totalorder %s356_s20, %s1656_s5  ;;  %p1665_p5 = scmp.lt.s32.totalorder %s1656_s5, %s1656_s5 }
  0x53   : > { %p1659_p12 = pnand %p1657_p10, %p1947_p13  ;;  %p1666_p7 = por %p1665_p5, %p1664_p3 }
  0x55   : > { %p1660_p0 = pneg %p1659_p12 }
  0x57   : > { %p1667_p9 = pnand %p1666_p7, %p1660_p0 }
  0x59   : > { %1670 = shalt.err (!%p1667_p9)
}
  0x5a   : > { %1470 = dma.hbm_to_vmem [thread:$0]  (!%p1935_p11), %s2246_s6, 2048, %s356_s20, [#allocation6], %s2260_s9, %s2260_s9, %s1811_s11  }
  0x5b   : > { %s1812_s12 = smov [#allocation10]   ;;  %s1671_s26 = scalar_lea.hbm %s2250_s10, 1024 }
  0x5c   : > { %s387_s21 = sshll.u32 %s1812_s12, 4  ;;  %p1672_p1 = scmp.ne.s32.totalorder %s2250_s10, %s1671_s26  ;;  %s388_s21 = int_to_ptr.vmem [resolvable:$true] %s387_s21 }
  0x5d   : > { %p1678_p6 = scmp.lt.u32.totalorder %s1671_s26, %s2250_s10 }
  0x5e   : > { %p1674_p2 = pnand %p1672_p1, %p1947_p13 }
  0x60   : > { %p1675_p4 = pneg %p1674_p2 }
  0x62   : > { %p1680_p8 = pnand %p1678_p6, %p1675_p4 }
  0x64   : > { %1683 = shalt.err (!%p1680_p8)
}
  0x65   : > { %s1684_s20 = scalar_lea.vmem %s388_s21, 1024  ;;  %p1692_p3 = scmp.lt.s32.totalorder %s388_s21, %s388_s21 }
  0x66   : > { %p1685_p10 = scmp.ne.s32.totalorder %s388_s21, %s1684_s20  ;;  %p1693_p5 = scmp.lt.s32.totalorder %s1684_s20, %s1684_s20 }
  0x68   : > { %p1687_p12 = pnand %p1685_p10, %p1947_p13  ;;  %p1694_p7 = por %p1693_p5, %p1692_p3 }
  0x6a   : > { %p1688_p0 = pneg %p1687_p12 }
  0x6c   : > { %p1695_p9 = pnand %p1694_p7, %p1688_p0 }
  0x6e   : > { %1698 = shalt.err (!%p1695_p9)
}
  0x6f   : > { %s2273_s16 = smov 64   ;;  %s2030_s30 = sadd.s32 1, %s1803_s24  }
  0x70   : > { %1476 = dma.hbm_to_vmem [thread:$0]  (!%p1935_p11), %s2250_s10, 1024, %s388_s21, [#allocation9], %s2273_s16, %s2273_s16, %s1808_s18  }
  0x71   : > { %s37_s14 = sadd.s32 1, %s1799_s23  ;;  %s34_s12 = ssub.s32 %s1803_s24, %s2030_s30 }
  0x72   : > { %p44_p13 = scmp.ne.s32.totalorder %s1799_s23, %s1795_s22  ;;  %p35_p1 = scmp.eq.s32.totalorder %s34_s12, 0 }
  0x73   : > { %p45_p2 = scmp.eq.s32.totalorder %s1803_s24, 0  ;;  %p2274_p4 = scmp.eq.s32.totalorder %s1907_s25, 1 }
  0x74   : > { %p1489_p8 = scmp.lt.s32.totalorder %s1803_s24, 2  ;;  %s404_s26 = sand.u32 1, %s1799_s23  }
  0x75   : > { %p2040_p6 = por %p2274_p4, %p44_p13  ;;  %p46_p10 = por %p45_p2, %p44_p13 }
  0x76   : > { %s2046_s19 = scalar_select %p35_p1, %s1799_s23, %s37_s14  }
  0x77   : > { %s1441_s15 = smul.u32 24, %s404_s26  ;;  %p2050_p11 = pnand %p1489_p8, %p46_p10 }
  0x78   : > { %s1442_s18 = smul.u32 384, %s1803_s24  ;;  %s2061_s7 = scalar_lea.sflag [#allocation3], %s404_s26 }
  0x79   : > { %s408_s16 = scalar_lea.vmem [#allocation2], %s1441_s15  ;;  %p1701_p0 = pneg %p2050_p11 }
  0x7a   : > { %s2057_s20 = scalar_lea.hbm %s2240_s0, %s1442_s18  ;;  %s415_s17 = sshll.u32 %s408_s16, 4  ;;  %s2059_s17 = int_to_ptr.vmem [resolvable:$true] %s415_s17 }
  0x7b   : > { %s1699_s14 = scalar_lea.hbm %s2057_s20, 384  ;;  %s1704_s13 = scalar_lea.hbm %s2240_s0, 768 }
  0x7c   : > { %p1700_p12 = scmp.ne.s32.totalorder %s2057_s20, %s1699_s14  ;;  %p1705_p7 = scmp.lt.u32.totalorder %s2057_s20, %s2240_s0 }
  0x7d   : > { %p1706_p9 = scmp.lt.u32.totalorder %s1704_s13, %s1699_s14  ;;  %p1708_p1 = scmp.lt.u32.totalorder %s1699_s14, %s2057_s20 }
  0x7e   : > { %p1702_p3 = pnand %p1701_p0, %p1700_p12 }
  0x7f   : > { %p1707_p13 = por %p1706_p9, %p1705_p7 }
  0x80   : > { %p1703_p5 = pneg %p1702_p3 }
  0x81   : > { %p1709_p2 = por %p1708_p1, %p1707_p13 }
  0x83   : > { %p1710_p4 = pnand %p1709_p2, %p1703_p5 }
  0x85   : > { %1713 = shalt.err (!%p1710_p4)
}
  0x86   : > { %s1714_s26 = scalar_lea.vmem %s2059_s17, 384  ;;  %s1813_s15 = smov [#allocation2]  }
  0x87   : > { %p1715_p8 = scmp.ne.s32.totalorder %s2059_s17, %s1714_s26  ;;  %s1719_s16 = sshll.u32 %s1813_s15, 4  ;;  %s1720_s16 = int_to_ptr.vmem [resolvable:$false] %s1719_s16 }
  0x88   : > { %s1721_s9 = scalar_lea.vmem %s1720_s16, 768  ;;  %p1722_p3 = scmp.lt.s32.totalorder %s2059_s17, %s1720_s16 }
  0x89   : > { %p1717_p10 = pnand %p1715_p8, %p1701_p0  ;;  %p1723_p7 = scmp.lt.s32.totalorder %s1721_s9, %s1714_s26 }
  0x8b   : > { %p1718_p12 = pneg %p1717_p10  ;;  %p1724_p9 = por %p1723_p7, %p1722_p3 }
  0x8d   : > { %p1725_p13 = pnand %p1724_p9, %p1718_p12 }
  0x8f   : > { %1728 = shalt.err (!%p1725_p13)
}
  0x90   : > { %s2277_s14 = smov 128   ;;  %p2278_p0 = scmp.ne.s32.totalorder %s2270_s29, 0 }
  0x91   : > { %1480 = dma.hbm_to_vmem [thread:$0]  (!%p2050_p11), %s2057_s20, 384, %s2059_s17, %s2061_s7, %s2277_s14, %s2277_s14, %s1811_s11  }
  0x92   : > { %427 = sbr.rel (%p2278_p0) target bundleno = 1219 (0x4c3), region = 68  ;;  %s2095_s12 = sand.u32 (!%p2278_p0), 1, %s1795_s22  }
  0x93   : > { %s1443_s18 = smul.u32 (!%p2278_p0), 24, %s2095_s12  ;;  %s430_s13 = scalar_lea.sflag (!%p2278_p0), [#allocation3], %s2095_s12 }
  0x94   : > { %p2279_p5 = scmp.ne.s32.totalorder (!%p2278_p0), %s2267_s27, 0 }
  0x95   : > { %s2099_s5 = scalar_lea.vmem (!%p2278_p0), [#allocation2], %s1443_s18 }
  0x99   : > { %1774 = dma.done.wait (%p2279_p5), %s430_s13, 384  }
  0x9a   : > { %1776 = vsyncadd (%p2279_p5), %s430_s13, 4294966912  ;;  %p2280_p11 = scmp.eq.s32.totalorder %s1907_s25, 0 }
  0x9c   : > { %1778 = dma.done.wait (%p2280_p11), [#allocation6], 3072   ;;  %p2281_p1 = pmov %p2280_p11 }
  0x9e   : > { %1780 = vsyncadd (%p2281_p1), [#allocation6], 4294964224  ;;  %p2282_p2 = pmov %p2281_p1 }
  0x9f   : > { %p2283_p4 = pmov %p2281_p1 }
  0xa0   : > { %1782 = dma.done.wait (%p2282_p2), [#allocation9], 3072  }
  0xa1   : > { %1784 = vsyncadd (%p2283_p4), [#allocation9], 4294964224  ;;  %v1814_v0 = vmov 0   ;;  %v1543_v1 = vld [vmem:[#allocation5] sm:$0xff]   ;;  %v1544_v2 = vld [vmem:[#allocation5 + $0x8] sm:$0xff]   ;;  %v1815_v20 = vmov 0.0|0.0  }
  0xa2   : > { %1541 = vset.pattern.permute.xlu0 %v1814_v0  ;;  %1542 = vset.pattern.permute.xlu1 %v1814_v0  ;;  %v1545_v3 = vld [vmem:[#allocation5 + $0x10] sm:$0xff]   ;;  %v1546_v4 = vld [vmem:[#allocation5 + $0x18] sm:$0xff]   ;;  %v638_v10 = vld [vmem:[%s2241_s1 + $0x10] sm:$0xff]  ;;  %vm1816_vm0 = vmmov 0   ;;  %v1817_v26 = vmov 0.0   ;;  %vm680_vm1 = vcmask 1046528  }
  0xa3   : > { %1283 = vmatprep.subr.bf16.mxu0 %v1543_v1  ;;  %v491_v5 = vld [vmem:[%s2099_s5] sm:$0xff]  ;;  %v492_v6 = vld [vmem:[%s2099_s5 + $0x8] sm:$0xff]  ;;  %v1547_v11 = vld [vmem:[#allocation5 + $0x20] sm:$0xff]   ;;  %651 = vperm.xlu1 %1542, %v638_v10   ;;  %vm702_vm2 = vcmask 1045504   ;;  %s2284_s11 = sld [smem:[#allocation18_spill]]  ;;  %s2285_s17 = sld [smem:[#allocation19_spill]] }
  0xa4   : > { %1284 = vmatpush3.bf16.msra.mxu0 %v1543_v1  ;;  %v494_v7 = vpack.c.bf16 %v492_v6, %v491_v5  ;;  %v636_v8 = vld [vmem:[%s2241_s1] sm:$0xff]  ;;  %v637_v9 = vld [vmem:[%s2241_s1 + $0x8] sm:$0xff]  ;;  %v1548_v12 = vld [vmem:[#allocation5 + $0x28] sm:$0xff]   ;;  %1393 = vmatprep.subr.bf16.mxu1 %v1815_v20  ;;  %s2286_s15 = sld [smem:[#allocation20_spill]]  ;;  %s1194_s16 = sshll.u32 %s2095_s12, 4 }
  0xa5   : > { %1285 = vmatprep.subr.bf16.mxu0 %v1544_v2  ;;  %641 = vperm.xlu0 %1541, %v636_v8   ;;  %v1549_v13 = vld [vmem:[#allocation5 + $0x30] sm:$0xff]   ;;  %v1550_v14 = vld [vmem:[#allocation5 + $0x38] sm:$0xff]   ;;  %v744_v17 = vld [vmem:[#allocation7] sm:$0xff]  ;;  %s2287_s18 = sld [smem:[#allocation21_spill]]  ;;  %s489_s13 = scalar_lea.vmem [#allocation11], %s1194_s16 }
  0xa6   : > { %1299 = vmatprep.mubr.bf16.mxu0 %v494_v7  ;;  %v493_v15 = vld [vmem:[%s2099_s5 + $0x10] sm:$0xff]  ;;  %v745_v18 = vld [vmem:[#allocation7 + $0x8] sm:$0xff]  ;;  %v746_v21 = vld [vmem:[#allocation7 + $0x10] sm:$0xff]  ;;  %1335 = vmatprep.mubr.msk.f32.mxu1 %vm1816_vm0, %v1817_v26  ;;  %s1070_s27 = sshll.u32 %s489_s13, 4  ;;  %s1229_s29 = sshll.u32 %s1907_s25, 8  ;;  %s2191_s27 = int_to_ptr.vmem [resolvable:$true] %s1070_s27 }
  0xa7   : > { %v495_v16 = vpack.c.bf16 %v493_v15, %v493_v15  ;;  %v1394_v19 = vpack.c.bf16 %v745_v18, %v744_v17  ;;  %v747_v22 = vld [vmem:[#allocation7 + $0x18] sm:$0xff]  ;;  %v748_v24 = vld [vmem:[#allocation7 + $0x20] sm:$0xff]  ;;  %v749_v25 = vld [vmem:[#allocation7 + $0x28] sm:$0xff]  ;;  %s2288_s20 = sld [smem:[#allocation22_spill]]  ;;  %s1057_s7 = scalar_lea.sflag [#allocation4], %s2095_s12 }
  0xa8   : > { %1286 = vmatpush3.bf16.msra.mxu0 %v1544_v2  ;;  %v1397_v23 = vpack.c.bf16 %v747_v22, %v746_v21  ;;  %v1400_v27 = vpack.c.bf16 %v749_v25, %v748_v24  ;;  %v750_v28 = vld [vmem:[#allocation7 + $0x30] sm:$0xff]  ;;  %v751_v29 = vld [vmem:[#allocation7 + $0x38] sm:$0xff]  ;;  %v752_v31 = vld [vmem:[#allocation7 + $0x40] sm:$0xff]  ;;  %s1729_s25 = scalar_lea.vmem %s2191_s27, 256 }
  0xa9   : > { %1287 = vmatprep.subr.bf16.mxu0 %v1545_v3  ;;  %646 = vperm.xlu0 %1541, %v637_v9   ;;  %v1403_v30 = vpack.c.bf16 %v751_v29, %v750_v28  ;;  %v753_v32 = vld [vmem:[#allocation7 + $0x48] sm:$0xff]  ;;  %v754_v34 = vld [vmem:[#allocation7 + $0x50] sm:$0xff]  ;;  %v755_v35 = vld [vmem:[#allocation7 + $0x58] sm:$0xff]  ;;  %p1730_p8 = scmp.ne.s32.totalorder %s2191_s27, %s1729_s25 }
  0xaa   : > { %1395 = vmatpush3.bf16.msra.mxu1 %v1394_v19  ;;  %v1406_v33 = vpack.c.bf16 %v753_v32, %v752_v31  ;;  %v1409_v36 = vpack.c.bf16 %v755_v35, %v754_v34  ;;  %v756_v37 = vld [vmem:[#allocation7 + $0x60] sm:$0xff]  ;;  %v757_v38 = vld [vmem:[#allocation7 + $0x68] sm:$0xff]  ;;  %v758_v40 = vld [vmem:[#allocation7 + $0x70] sm:$0xff] }
  0xab   : > { %1396 = vmatprep.subr.bf16.mxu1 %v1815_v20  ;;  %v1412_v39 = vpack.c.bf16 %v757_v38, %v756_v37  ;;  %v759_v41 = vld [vmem:[#allocation7 + $0x78] sm:$0xff]  ;;  %v1195_v43 = vld [vmem:[%s2243_s3] ss:$0 sm:$0xff]  ;;  %v1208_v2 = vld [vmem:[%s2244_s4 + $0x1] ss:$0 sm:$0xff]  ;;  %p1731_p10 = pnand %p1730_p8, %p2040_p6 }
  0xac   : > { %1288 = vmatpush3.bf16.msra.mxu0 %v1545_v3  ;;  %v1415_v42 = vpack.c.bf16 %v759_v41, %v758_v40  ;;  %v1209_v3 = vld [vmem:[%s2244_s4 + $0x2] ss:$0 sm:$0xff] }
  0xad   : > { %1289 = vmatprep.subr.bf16.mxu0 %v1546_v4  ;;  %p1732_p12 = pneg %p1731_p10 }
  0xae   : > { %1398 = vmatpush3.bf16.msra.mxu1 %v1397_v23 }
  0xaf   : > { %1399 = vmatprep.subr.bf16.mxu1 %v1815_v20 }
  0xb0   : > { %1290 = vmatpush3.bf16.msra.mxu0 %v1546_v4 }
  0xb1   : > { %1291 = vmatprep.subr.bf16.mxu0 %v1547_v11 }
  0xb2   : > { %1401 = vmatpush3.bf16.msra.mxu1 %v1400_v27 }
  0xb3   : > { %1402 = vmatprep.subr.bf16.mxu1 %v1815_v20 }
  0xb4   : > { %1292 = vmatpush3.bf16.msra.mxu0 %v1547_v11 }
  0xb5   : > { %1293 = vmatprep.subr.bf16.mxu0 %v1548_v12 }
  0xb6   : > { %1404 = vmatpush3.bf16.msra.mxu1 %v1403_v30 }
  0xb7   : > { %1405 = vmatprep.subr.bf16.mxu1 %v1815_v20 }
  0xb8   : > { %1294 = vmatpush3.bf16.msra.mxu0 %v1548_v12 }
  0xb9   : > { %1295 = vmatprep.subr.bf16.mxu0 %v1549_v13 }
  0xba   : > { %1407 = vmatpush3.bf16.msra.mxu1 %v1406_v33  ;;  %v1210_v33 = vld [vmem:[%s2284_s11] ss:$0 sm:$0xff] }
  0xbb   : > { %1408 = vmatprep.subr.bf16.mxu1 %v1815_v20 }
  0xbc   : > { %1296 = vmatpush3.bf16.msra.mxu0 %v1549_v13 }
  0xbd   : > { %1297 = vmatprep.subr.bf16.mxu0 %v1550_v14 }
  0xbe   : > { %1410 = vmatpush3.bf16.msra.mxu1 %v1409_v36 }
  0xbf   : > { %1411 = vmatprep.subr.bf16.mxu1 %v1815_v20 }
  0xc0   : > { %1298 = vmatpush3.bf16.msra.mxu0 %v1550_v14  ;;  %v1207_v14 = vld [vmem:[%s2244_s4] ss:$0 sm:$0xff] }
  0xc1   : > { %1417 = vmatprep.subr.bf16.mxu0 %v1815_v20 }
  0xc2   : > { %1413 = vmatpush3.bf16.msra.mxu1 %v1412_v39 }
  0xc3   : > { %1300 = vmatmul.mubr.bf16.vlgmr.msra.gmra.mrb[0].mxu0 %v495_v16  ;;  %1414 = vmatprep.subr.bf16.mxu1 %v1815_v20 }
  0xc4   : > { %1370 = vmatprep.mubr.msk.f32.mxu0 %vm1816_vm0, %v1817_v26 }
  0xc6   : > { %1416 = vmatpush3.bf16.msra.mxu1 %v1415_v42 }
  0xc7   : > { %1373 = vmatprep.subr.bf16.mxu1 %v1817_v26 }
 0x122   : > { %v652_v62 = vpop.permute.xlu1 %651 }
 0x124   : > { %v642_v60 = vpop.permute.xlu0 %641 }
 0x128   : > { %v647_v8 = vpop.permute.xlu0 %646 }
 0x196   : > { %v1301_v44 = vpop.f32.mrb[0].mxu0 }
 0x197   : > { %v610_v45 = vadd.f32 %v1301_v44, %v1195_v43  ;;  %v601_v46 = vpop.f32.mrb[1].mxu0 }
 0x198   : > { %v602_v47 = vadd.f32 %v1195_v43, %v601_v46  ;;  %v1302_v48 = vpop.f32.mrb[2].mxu0 }
 0x199   : > { %v1206_v49 = vmul.f32 -1.442695, %v610_v45  ;;  %v604_v50 = vpop.f32.mrb[3].mxu0 }
 0x19a   : > { %v1204_v51 = vmul.f32 -1.442695, %v602_v47  ;;  %v605_v52 = vadd.f32 %v1195_v43, %v604_v50 }
 0x19b   : > { %1559 = vpow2.f32 %v1206_v49 }
 0x19c   : > { %1561 = vpow2.f32 %v1204_v51  ;;  %v1205_v53 = vmul.f32 -1.442695, %v605_v52 }
 0x19e   : > { %1563 = vpow2.f32 %v1205_v53 }
 0x1a5   : > { %v1560_v54 = vpop.eup %1559 }
 0x1a6   : > { %v1562_v55 = vpop.eup %1561  ;;  %v626_v56 = vadd.f32 1.0, %v1560_v54 }
 0x1a7   : > { %v624_v57 = vadd.f32 1.0, %v1562_v55 }
 0x1a8   : > { %v1564_v58 = vpop.eup %1563  ;;  %1565 = vrcp.f32 %v626_v56  ;;  %v838_v56 = vld [vmem:[#allocation8] sm:$0xff] }
 0x1a9   : > { %1567 = vrcp.f32 %v624_v57  ;;  %v625_v59 = vadd.f32 1.0, %v1564_v58  ;;  %v839_v57 = vld [vmem:[#allocation8 + $0x8] sm:$0xff] }
 0x1aa   : > { %v1418_v58 = vpack.c.bf16 %v839_v57, %v838_v56 }
 0x1ab   : > { %1569 = vrcp.f32 %v625_v59  ;;  %v840_v59 = vld [vmem:[#allocation8 + $0x10] sm:$0xff] }
 0x1ac   : > { %1419 = vmatpush3.bf16.msra.mxu0 %v1418_v58 }
 0x1ad   : > { %1420 = vmatprep.subr.bf16.mxu0 %v1815_v20 }
 0x1b2   : > { %v1566_v61 = vpop.eup %1565 }
 0x1b3   : > { %v1568_v63 = vpop.eup %1567  ;;  %v635_v0 = vmul.f32 %v1566_v61, %v610_v45 }
 0x1b4   : > { %v633_v1 = vmul.f32 %v1568_v63, %v602_v47  ;;  %v843_v63 = vld [vmem:[#allocation8 + $0x28] sm:$0xff] }
 0x1b5   : > { %v1570_v4 = vpop.eup %1569  ;;  %v656_v5 = vmul.f32 %v652_v62, %v635_v0  ;;  %v842_v62 = vld [vmem:[#allocation8 + $0x20] sm:$0xff] }
 0x1b6   : > { %v654_v6 = vmul.f32 %v642_v60, %v633_v1  ;;  %v634_v7 = vmul.f32 %v1570_v4, %v605_v52  ;;  %v841_v60 = vld [vmem:[#allocation8 + $0x18] sm:$0xff]  ;;  %v1424_v0 = vpack.c.bf16 %v843_v63, %v842_v62  ;;  %v844_v1 = vld [vmem:[#allocation8 + $0x30] sm:$0xff]  ;;  %v846_v4 = vld [vmem:[#allocation8 + $0x40] sm:$0xff] }
 0x1b7   : > { %v676_v9 = vmul.f32 %v1208_v2, %v656_v5  ;;  %v698_v10 = vmul.f32 %v1209_v3, %v656_v5  ;;  %v1421_v61 = vpack.c.bf16 %v841_v60, %v840_v59  ;;  %v847_v5 = vld [vmem:[#allocation8 + $0x48] sm:$0xff] }
 0x1b8   : > { %v655_v11 = vmul.f32 %v647_v8, %v634_v7  ;;  %v674_v12 = vmul.f32 %v1208_v2, %v654_v6  ;;  %v696_v13 = vmul.f32 %v1209_v3, %v654_v6  ;;  %v666_v24 = vmul.f32 %v1207_v14, %v654_v6  ;;  %v848_v7 = vld [vmem:[#allocation8 + $0x50] sm:$0xff]  ;;  %v849_v8 = vld [vmem:[#allocation8 + $0x58] sm:$0xff] }
 0x1b9   : > { %v684_v17 = vrot.slane %v676_v9, 1  ;;  %v706_v18 = vrot.slane %v698_v10, 2  ;;  %1422 = vmatpush3.bf16.msra.mxu0 %v1421_v61  ;;  %v1430_v6 = vpack.c.bf16 %v847_v5, %v846_v4  ;;  %v1433_v9 = vpack.c.bf16 %v849_v8, %v848_v7  ;;  %v850_v10 = vld [vmem:[#allocation8 + $0x60] sm:$0xff] }
 0x1ba   : > { %v675_v15 = vmul.f32 %v1208_v2, %v655_v11  ;;  %v697_v16 = vmul.f32 %v1209_v3, %v655_v11  ;;  %v681_v19 = vrot.slane %v674_v12, 1  ;;  %v703_v22 = vrot.slane %v696_v13, 2  ;;  %1423 = vmatprep.subr.bf16.mxu0 %v1815_v20  ;;  %v845_v2 = vld [vmem:[#allocation8 + $0x38] sm:$0xff]  ;;  %v852_v13 = vld [vmem:[#allocation8 + $0x70] sm:$0xff] }
 0x1bb   : > { %v667_v25 = vmul.f32 %v1207_v14, %v655_v11  ;;  %v1427_v3 = vpack.c.bf16 %v845_v2, %v844_v1  ;;  %v851_v11 = vld [vmem:[#allocation8 + $0x68] sm:$0xff]  ;;  %v853_v14 = vld [vmem:[#allocation8 + $0x78] sm:$0xff] }
 0x1bc   : > { %v682_v21 = vrot.slane %v675_v15, 1  ;;  %v704_v23 = vrot.slane %v697_v16, 2  ;;  %v1436_v12 = vpack.c.bf16 %v851_v11, %v850_v10  ;;  %v1439_v15 = vpack.c.bf16 %v853_v14, %v852_v13  ;;  %v760_v16 = vld [vmem:[%s2285_s17] sm:$0x1]  ;;  %s2196_s17 = scalar_lea.hbm %s2288_s20, %s1229_s29 }
 0x1bd   : > { %1425 = vmatpush3.bf16.msra.mxu0 %v1424_v0 }
 0x1be   : > { %v683_v27 = vsel %vm680_vm1, %v681_v19, %v682_v21  ;;  %v685_v28 = vsel %vm680_vm1, %v682_v21, %v684_v17  ;;  %v705_v29 = vsel %vm702_vm2, %v703_v22, %v704_v23  ;;  %v707_v30 = vsel %vm702_vm2, %v704_v23, %v706_v18  ;;  %1426 = vmatprep.subr.bf16.mxu0 %v1815_v20 }
 0x1bf   : > { %v688_v31 = vadd.f32 %v683_v27, %v666_v24  ;;  %v689_v32 = vadd.f32 %v685_v28, %v667_v25  ;;  %v1552_v27 = vld [vmem:[#allocation10 + $0x8] sm:$0xff]   ;;  %v1553_v28 = vld [vmem:[#allocation10 + $0x10] sm:$0xff]  }
 0x1c1   : > { %v710_v34 = vadd.f32 %v705_v29, %v688_v31  ;;  %v711_v35 = vadd.f32 %v707_v30, %v689_v32  ;;  %1428 = vmatpush3.bf16.msra.mxu0 %v1427_v3  ;;  %v1554_v29 = vld [vmem:[#allocation10 + $0x18] sm:$0xff]   ;;  %v1555_v30 = vld [vmem:[#allocation10 + $0x20] sm:$0xff]   ;;  %v1556_v31 = vld [vmem:[#allocation10 + $0x28] sm:$0xff]  }
 0x1c2   : > { %1429 = vmatprep.subr.bf16.mxu0 %v1815_v20  ;;  %v1557_v32 = vld [vmem:[#allocation10 + $0x30] sm:$0xff]  }
 0x1c3   : > { %v719_v36 = vadd.f32 %v1210_v33, %v710_v34  ;;  %v720_v37 = vadd.f32 %v1210_v33, %v711_v35  ;;  %v1558_v33 = vld [vmem:[#allocation10 + $0x38] sm:$0xff]   ;;  %v854_v34 = vld [vmem:[%s2286_s15] sm:$0x1] }
 0x1c5   : > { %v1211_v38 = vmul.f32 -1.442695, %v719_v36  ;;  %v1212_v39 = vmul.f32 -1.442695, %v720_v37  ;;  %1431 = vmatpush3.bf16.msra.mxu0 %v1430_v6 }
 0x1c6   : > { %1432 = vmatprep.subr.bf16.mxu0 %v1815_v20 }
 0x1c7   : > { %1571 = vpow2.f32 %v1211_v38 }
 0x1c8   : > { %1573 = vpow2.f32 %v1212_v39 }
 0x1c9   : > { %1434 = vmatpush3.bf16.msra.mxu0 %v1433_v9 }
 0x1ca   : > { %1435 = vmatprep.subr.bf16.mxu0 %v1815_v20 }
 0x1cd   : > { %1437 = vmatpush3.bf16.msra.mxu0 %v1436_v12 }
 0x1ce   : > { %1438 = vmatprep.subr.bf16.mxu0 %v1815_v20  ;;  %v1551_v20 = vld [vmem:[#allocation10] sm:$0xff]  }
 0x1d1   : > { %v1572_v40 = vpop.eup %1571  ;;  %1440 = vmatpush3.bf16.msra.mxu0 %v1439_v15 }
 0x1d2   : > { %v1574_v41 = vpop.eup %1573  ;;  %v727_v42 = vadd.f32 1.0, %v1572_v40 }
 0x1d3   : > { %v728_v43 = vadd.f32 1.0, %v1574_v41  ;;  %v931_v41 = vlaneseq }
 0x1d4   : > { %1575 = vrcp.f32 %v727_v42 }
 0x1d5   : > { %1577 = vrcp.f32 %v728_v43  ;;  %v932_v42 = vshrl.u32 %v931_v41, 7 }
 0x1d7   : > { %v933_v43 = vsub.s32 0, %v932_v42 }
 0x1de   : > { %v1576_v44 = vpop.eup %1575 }
 0x1df   : > { %v1578_v45 = vpop.eup %1577  ;;  %v2154_v46 = vmul.f32 %v1576_v44, %v719_v36 }
 0x1e0   : > { %v2156_v47 = vmul.f32 %v1578_v45, %v720_v37 }
 0x1e2   : > { %v735_v48 = vadd.f32 %v2156_v47, %v2154_v46 }
 0x1e4   : > { %v736_v49 = vrot.slane %v735_v48, 4 }
 0x1e6   : > { %v737_v50 = vadd.f32 %v736_v49, %v735_v48 }
 0x1e8   : > { %v738_v51 = vrot.slane %v737_v50, 2 }
 0x1ea   : > { %v739_v52 = vadd.f32 %v738_v51, %v737_v50  ;;  %v1215_v50 = vld [vmem:[%s2287_s18] ss:$0 sm:$0xff] }
 0x1ec   : > { %v740_v53 = vrot.slane %v739_v52, 1 }
 0x1ee   : > { %v741_v54 = vadd.f32 %v740_v53, %v739_v52  ;;  %v1050_v52 = vld [vmem:[%s2099_s5 + $0x1] sm:$0xff] }
 0x1f0   : > { %v743_v55 = vmul.f32 0.0625, %v741_v54 }
 0x1f2   : > { %1336 = vmatmul.mubr.f32.vlgmr.msra.gmra.mrb[0].mxu1 %v743_v55 }
 0x1f3   : > { %1389 = vmatprep.mubr.msk.bf16.mxu1 %vm1816_vm0, %v1817_v26  ;;  %1374 = vmatpush3.bf16.msra.mxu1 %v1551_v20 }
 0x1f4   : > { %1375 = vmatprep.subr.bf16.mxu1 %v1817_v26 }
 0x1f7   : > { %1376 = vmatpush3.bf16.msra.mxu1 %v1552_v27 }
 0x1f8   : > { %1377 = vmatprep.subr.bf16.mxu1 %v1817_v26 }
 0x1fb   : > { %1378 = vmatpush3.bf16.msra.mxu1 %v1553_v28 }
 0x1fc   : > { %1379 = vmatprep.subr.bf16.mxu1 %v1817_v26 }
 0x1ff   : > { %1380 = vmatpush3.bf16.msra.mxu1 %v1554_v29 }
 0x200   : > { %1381 = vmatprep.subr.bf16.mxu1 %v1817_v26 }
 0x203   : > { %1382 = vmatpush3.bf16.msra.mxu1 %v1555_v30 }
 0x204   : > { %1383 = vmatprep.subr.bf16.mxu1 %v1817_v26 }
 0x207   : > { %1384 = vmatpush3.bf16.msra.mxu1 %v1556_v31 }
 0x208   : > { %1385 = vmatprep.subr.bf16.mxu1 %v1817_v26 }
 0x20b   : > { %1386 = vmatpush3.bf16.msra.mxu1 %v1557_v32 }
 0x20c   : > { %1387 = vmatprep.subr.bf16.mxu1 %v1817_v26 }
 0x20f   : > { %1388 = vmatpush3.bf16.msra.mxu1 %v1558_v33 }
 0x2c5   : > { %v827_v17 = vpop.f32.mrb[0].mxu1 }
 0x2c6   : > { %v828_v18 = vadd.f32 %v827_v17, %v760_v16  ;;  %v1337_v19 = vpop.f32.mrb[1].mxu1 }
 0x2c8   : > { %v1213_v21 = vmul.f32 -1.442695, %v828_v18 }
 0x2ca   : > { %1579 = vpow2.f32 %v1213_v21 }
 0x2d4   : > { %v1580_v22 = vpop.eup %1579 }
 0x2d5   : > { %v834_v23 = vadd.f32 1.0, %v1580_v22 }
 0x2d7   : > { %1581 = vrcp.f32 %v834_v23 }
 0x2e1   : > { %v1582_v24 = vpop.eup %1581 }
 0x2e2   : > { %v837_v25 = vmul.f32 %v1582_v24, %v828_v18 }
 0x2e4   : > { %1371 = vmatmul.mubr.f32.vlgmr.msra.gmra.mrb[4].mxu0 %v837_v25 }
 0x3b7   : > { %v921_v35 = vpop.f32.mrb[4].mxu0 }
 0x3b8   : > { %v922_v36 = vadd.f32 %v921_v35, %v854_v34  ;;  %v1372_v37 = vpop.f32.mrb[5].mxu0 }
 0x3ba   : > { %v1214_v38 = vmul.f32 -1.442695, %v922_v36 }
 0x3bc   : > { %1583 = vpow2.f32 %v1214_v38 }
 0x3c6   : > { %v1584_v39 = vpop.eup %1583 }
 0x3c7   : > { %v928_v40 = vadd.f32 1.0, %v1584_v39 }
 0x3c9   : > { %1585 = vrcp.f32 %v928_v40 }
 0x3d3   : > { %v1586_v26 = vpop.eup %1585 }
 0x3d4   : > { %v934_v44 = vrot.slane %v1586_v26, %v933_v43 }
 0x3d6   : > { %v935_v45 = vmul.f32 %v934_v44, %v2154_v46  ;;  %v936_v48 = vmul.f32 %v934_v44, %v2156_v47  ;;  %v1051_v46 = vld [vmem:[%s2099_s5 + $0x9] sm:$0xff]  ;;  %s1818_s5 = smov [#allocation11]  }
 0x3d7   : > { %s1733_s26 = sshll.u32 %s1818_s5, 4  ;;  %s1734_s26 = int_to_ptr.vmem [resolvable:$false] %s1733_s26 }
 0x3d8   : > { %v937_v49 = vpack.c.bf16 %v936_v48, %v935_v45  ;;  %s1735_s15 = scalar_lea.vmem %s1734_s26, 512  ;;  %p1736_p3 = scmp.lt.s32.totalorder %s2191_s27, %s1734_s26 }
 0x3d9   : > { %p1737_p7 = scmp.lt.s32.totalorder %s1735_s15, %s1729_s25 }
 0x3da   : > { %1390 = vmatmul.mubr.bf16.vlgmr.msra.gmra.mrb[4].mxu1 %v937_v49 }
 0x3db   : > { %p1738_p9 = por %p1737_p7, %p1736_p3 }
 0x3dd   : > { %p1739_p13 = pnand %p1738_p9, %p1732_p12 }
 0x4ad   : > { %v1043_v51 = vpop.f32.mrb[4].mxu1 }
 0x4ae   : > { %v1044_v53 = vadd.f32 %v1215_v50, %v1043_v51  ;;  %v1391_v54 = vpop.f32.mrb[5].mxu1 }
 0x4af   : > { %v1046_v55 = vpop.f32.mrb[6].mxu1 }
 0x4b0   : > { %v1052_v56 = vadd.f32 %v1050_v52, %v1044_v53  ;;  %v1047_v47 = vadd.f32 %v1215_v50, %v1046_v55  ;;  %v1392_v57 = vpop.f32.mrb[7].mxu1 }
 0x4b2   : > { %1054 = vst [vmem:[%s489_s13] sm:$0xff] %v1052_v56  ;;  %v1053_v58 = vadd.f32 %v1051_v46, %v1047_v47 }
 0x4b4   : > { %1055 = vst [vmem:[%s489_s13 + $0x8] sm:$0xff] %v1053_v58 }
 0x4b5   : > { %1742 = shalt.err (!%p1739_p13)
}
 0x4b6   : > { %s1743_s16 = scalar_lea.hbm %s2196_s17, 256  ;;  %s1747_s18 = scalar_lea.hbm %s2288_s20, 512 }
 0x4b7   : > { %p1744_p0 = scmp.ne.s32.totalorder %s2196_s17, %s1743_s16  ;;  %p1748_p1 = scmp.lt.u32.totalorder %s2196_s17, %s2288_s20 }
 0x4b8   : > { %p1749_p2 = scmp.lt.u32.totalorder %s1747_s18, %s1743_s16  ;;  %p1751_p8 = scmp.lt.u32.totalorder %s1743_s16, %s2196_s17 }
 0x4b9   : > { %p1745_p5 = pnand %p1744_p0, %p2040_p6 }
 0x4ba   : > { %p1750_p4 = por %p1749_p2, %p1748_p1 }
 0x4bb   : > { %p1746_p11 = pneg %p1745_p5 }
 0x4bc   : > { %p1752_p10 = por %p1751_p8, %p1750_p4 }
 0x4be   : > { %p1753_p12 = pnand %p1752_p10, %p1746_p11 }
 0x4c0   : > { %1756 = shalt.err (!%p1753_p12)
}
 0x4c1   : > { %s1819_s11 = smov 128   ;;  %s1820_s21 = smov 8  }
 0x4c2   : > { %1462 = dma.vmem_to_hbm [thread:$0]  (%p2040_p6), %s2191_s27, 256, %s2196_s17, %s1057_s7, %s1819_s11, %s1819_s11, %s1820_s21  }
 0x4c3 PF: > { %s2289_s25 = sld [smem:[#allocation16_spill]]  ;;  %s2290_s5 = sld [smem:[#allocation17_spill]] }
 0x4c4   : > { %p2292_p7 = scmp.ge.s32.totalorder %s1803_s24, 2 }
 0x4c9   : > { %s1085_s26 = sand.u32 1, %s2289_s25   ;;  %p2291_p3 = scmp.ne.s32.totalorder %s2290_s5, 0 }
 0x4ca   : > { %s1086_s15 = scalar_lea.sflag [#allocation4], %s1085_s26 }
 0x4cb   : > { %p1482_p9 = pnand %p2292_p7, %p2291_p3 }
 0x4cd   : > { %1786 = dma.done.wait (!%p1482_p9), %s1086_s15, 256  }
 0x4ce   : > { %1788 = vsyncadd (!%p1482_p9), %s1086_s15, 4294967040  ;;  %p27_p13 = scmp.ge.s32.totalorder %s2030_s30, 4   ;;  %s2293_s21 = smov %s1795_s22 }
 0x4cf   : > { %s2294_s22 = smov %s1799_s23  ;;  %s2295_s23 = smov %s2046_s19 }
 0x4d0   : > { %s2296_s24 = smov %s2030_s30  ;;  %29 = sbr.rel (!%p27_p13) target bundleno = 13 (0xd), region = 129 }
 0x4d7   :  { %1091 = vsyncpa [#allocation3], 1 }
 0x4d8   :  { %1093 = vsyncpa [#allocation3 + $0x1], 1 }
 0x4d9   :  { %1094 = vsyncpa [#allocation6], 1 }
 0x4da   :  { %1095 = vsyncpa [#allocation9], 1 }
 0x4db   :  { %1096 = vsyncpa [#allocation4], 1 }
 0x4dc   :  { %1098 = vsyncpa [#allocation4 + $0x1], 1 }

</bundles_post_ra>
